<compile_context>
chip_gen: v5e
topology: v5e:2x2
jax: 0.10.0
libtpu: 0.0.40
codegen_flags: <defaults>
</compile_context>

<pallas_src>
import functools

import jax
import jax.numpy as jnp
from jax import lax
from jax.experimental import pallas as pl
from jax.experimental.pallas import tpu as pltpu

IGNORE_INDEX = 255


def _ce_block_kernel(x_ref, t_ref, out_ref, *, total_pixels, emit_lane_partials):
    # x_ref: (1, C, S, L) logits block  (classes on leading axis, pixels on (S, L))
    # t_ref: (1, 1, S, L) int32 targets
    # out_ref: (1, 1, 2, 128) -> row 0: loss partials, row 1: valid-count partials
    p = pl.program_id(1)
    x = x_ref[0]                                   # (C, S, L), original dtype
    tgt = t_ref[0, 0]                              # (S, L) int32
    C, S, L = x.shape

    # Global flat pixel index -> bounds mask (handles the un-padded ragged tail;
    # any OOB garbage read by the last block is masked out here).
    s_iota = lax.broadcasted_iota(jnp.int32, (S, L), 0)
    l_iota = lax.broadcasted_iota(jnp.int32, (S, L), 1)
    flat_idx = p * (S * L) + s_iota * L + l_iota
    in_bounds = flat_idx < total_pixels

    # Numerically-stable logsumexp over the class axis (axis 0 -> cross-vreg
    # VALU ops; per-pixel intermediates live on full (S, L) tiles).
    m = jnp.max(x, axis=0)                         # exact in bf16 or f32
    mf = m.astype(jnp.float32)
    e = jnp.exp(x.astype(jnp.float32) - mf[None])  # (C, S, L) f32
    lse = mf + jnp.log(jnp.sum(e, axis=0))         # (S, L)

    # Target-class logit via one-hot select on the raw logits (no log-softmax
    # tensor is materialized).
    class_ids = lax.broadcasted_iota(jnp.int32, (C, S, L), 0)
    picked = jnp.sum(
        jnp.where(class_ids == tgt[None], x.astype(jnp.float32), 0.0), axis=0)

    valid = jnp.logical_and(in_bounds, tgt != IGNORE_INDEX)
    loss = jnp.where(valid, lse - picked, 0.0)     # (S, L)
    cnt = valid.astype(jnp.float32)

    if emit_lane_partials:
        # L == 128: keep per-lane partials (vreg adds only); the cross-lane sum
        # is folded into the tiny JAX epilogue.
        psum = jnp.sum(loss, axis=0).reshape(1, 128)
        pcnt = jnp.sum(cnt, axis=0).reshape(1, 128)
    else:
        psum = jnp.full((1, 128), jnp.sum(loss), dtype=jnp.float32)
        pcnt = jnp.full((1, 128), jnp.sum(cnt), dtype=jnp.float32)

    out_ref[...] = jnp.concatenate([psum, pcnt], axis=0).reshape(1, 1, 2, 128)


def _vmem_budget():
    """(block-sizing budget, vmem_limit_bytes), branched on chip VMEM size."""
    try:
        cap = int(getattr(pltpu.get_tpu_info(), "vmem_capacity_bytes"))
    except Exception:
        cap = 64 * 2 ** 20                         # conservative (v7x-sized)
    if cap <= 64 * 2 ** 20:
        # v7x-class: 64 MiB physical VMEM; leave headroom for Mosaic scratch.
        return 40 * 2 ** 20, 46 * 2 ** 20
    # v5e / v6e: 128 MiB physical VMEM.
    return 88 * 2 ** 20, 100 * 2 ** 20


def cross_entropy_loss_2d(output, target):
    """output: (N, C, H, W) float; target: (N, H, W) int.

    Returns the scalar mean cross-entropy with ignore_index=255 (PyTorch
    semantics).  NOTE: if every pixel is ignore_index the result is 0/0 = NaN,
    same as PyTorch.
    """
    # TODO(synk): per-class `weight=` of nn.CrossEntropyLoss is not implemented
    # (the reference module uses the default weight=None).
    # TODO(synk): out-of-range (non-255, >= C) labels silently contribute lse
    # instead of raising like PyTorch.
    N, C, H, W = output.shape
    HW = H * W
    itemsize = jnp.dtype(output.dtype).itemsize

    vmem_budget, vmem_limit = _vmem_budget()

    # Per-pixel VMEM cost estimate: double-buffered logits+targets blocks plus
    # the in-kernel f32 temporaries (exp(x-m), f32 cast) and a few (S,L) temps.
    per_pixel = 2 * (C * itemsize + 4) + 8 * C + 32
    budget_pixels = max(1024, vmem_budget // per_pixel)

    # Keep >= ~4 blocks total (both v7x TensorCores busy, pipelining alive).
    min_p_blocks = max(2, -(-4 // N))

    if HW % 128 == 0:
        # Fast path: pixels on (sublane, lane) tiles via a free reshape.
        R = HW // 128
        logits = output.reshape(N, C, R, 128)
        tgt = target.reshape(N, 1, R, 128).astype(jnp.int32)

        sub = min(budget_pixels // 128, 512)       # ~4-8 MiB logits blocks
        sub = min(sub, max(8, -(-R // min_p_blocks)))
        if sub >= R or R <= 8:
            sub = R                                # single block == full extent
        else:
            sub = max(8, (sub // 8) * 8)           # (8,128) alignment
        num_p = -(-R // sub)

        grid = (N, num_p)
        in_specs = [
            pl.BlockSpec((1, C, sub, 128), lambda n, p: (n, 0, p, 0)),
            pl.BlockSpec((1, 1, sub, 128), lambda n, p: (n, 0, p, 0)),
        ]
        lane_partials = True
    else:
        # Ragged HW: keep the flat pixel axis (no HBM copy), mask the tail
        # in-kernel on the global pixel index.
        logits = output.reshape(N, C, 1, HW)
        tgt = target.reshape(N, 1, 1, HW).astype(jnp.int32)

        if HW < 128:
            tile = HW                              # block == full extent
        else:
            tile = min(budget_pixels, 64 * 1024)
            tile = min(tile, max(128, -(-HW // min_p_blocks)))
            tile = max(128, (tile // 128) * 128)
            tile = min(tile, (HW // 128) * 128)
        num_p = -(-HW // tile)

        grid = (N, num_p)
        in_specs = [
            pl.BlockSpec((1, C, 1, tile), lambda n, p: (n, 0, 0, p)),
            pl.BlockSpec((1, 1, 1, tile), lambda n, p: (n, 0, 0, p)),
        ]
        lane_partials = False

    kernel = functools.partial(
        _ce_block_kernel, total_pixels=HW, emit_lane_partials=lane_partials)

    parts = pl.pallas_call(
        kernel,
        out_shape=jax.ShapeDtypeStruct((N, num_p, 2, 128), jnp.float32),
        grid_spec=pltpu.PrefetchScalarGridSpec(
            num_scalar_prefetch=0,
            grid=grid,
            in_specs=in_specs,
            out_specs=pl.BlockSpec((1, 1, 2, 128), lambda n, p: (n, p, 0, 0)),
        ),
        compiler_params=pltpu.CompilerParams(
            dimension_semantics=("parallel", "parallel"),
            vmem_limit_bytes=int(vmem_limit),
        ),
    )(logits, tgt)

    if lane_partials:
        total_sum = jnp.sum(parts[:, :, 0, :])
        total_cnt = jnp.sum(parts[:, :, 1, :].astype(jnp.int32))
    else:
        total_sum = jnp.sum(parts[:, :, 0, 0])
        total_cnt = jnp.sum(parts[:, :, 1, 0].astype(jnp.int32))

    # All-ignored input -> 0/0 = NaN, matching PyTorch.
    return total_sum / total_cnt.astype(jnp.float32)


def _reference(output, target):
    # pure-JAX reference for sanity checking
    N, C, H, W = output.shape
    logits = jnp.transpose(output, (0, 2, 3, 1)).reshape(-1, C).astype(jnp.float32)
    tgt = target.reshape(-1).astype(jnp.int32)
    logp = jax.nn.log_softmax(logits, axis=-1)
    picked = jnp.take_along_axis(
        logp, jnp.clip(tgt, 0, C - 1)[:, None], axis=-1)[:, 0]
    valid = tgt != IGNORE_INDEX
    return jnp.sum(jnp.where(valid, -picked, 0.0)) / jnp.sum(valid.astype(jnp.float32))


if __name__ == "__main__":
    key = jax.random.PRNGKey(0)
    k1, k2, k3, k4, k5, k6 = jax.random.split(key, 6)

    # Case 1: HW % 128 == 0 -> (SUB, 128) fast path.
    N, C, H, W = 2, 4, 16, 16
    output = jax.random.normal(k1, (N, C, H, W), dtype=jnp.float32)
    target = jax.random.randint(k2, (N, H, W), 0, C, dtype=jnp.int32)
    ignore_mask = jax.random.bernoulli(k3, 0.1, (N, H, W))
    target = jnp.where(ignore_mask, IGNORE_INDEX, target)

    loss = jax.block_until_ready(cross_entropy_loss_2d(output, target))
    ref = jax.block_until_ready(_reference(output, target))
    assert jnp.allclose(loss, ref, atol=1e-4, rtol=1e-5), (loss, ref)

    # Case 2: ragged HW (not a multiple of 128) -> un-padded, masked-tail path.
    N2, C2, H2, W2 = 2, 5, 10, 20
    output2 = jax.random.normal(k4, (N2, C2, H2, W2), dtype=jnp.float32)
    target2 = jax.random.randint(k5, (N2, H2, W2), 0, C2, dtype=jnp.int32)
    ignore_mask2 = jax.random.bernoulli(k6, 0.1, (N2, H2, W2))
    target2 = jnp.where(ignore_mask2, IGNORE_INDEX, target2)

    loss2 = jax.block_until_ready(cross_entropy_loss_2d(output2, target2))
    ref2 = jax.block_until_ready(_reference(output2, target2))
    assert jnp.allclose(loss2, ref2, atol=1e-4, rtol=1e-5), (loss2, ref2)

    print("KERNEL_OK")
</pallas_src>

<mosaic_0001>
module attributes {stable_mosaic.version = 11 : i64} {
  func.func @_ce_block_kernel(%arg0: i32, %arg1: i32, %arg2: memref<1x4x2x128xf32, #tpu.memory_space<vmem>>, %arg3: memref<1x1x2x128xi32, #tpu.memory_space<vmem>>, %arg4: memref<1x1x2x128xf32, #tpu.memory_space<vmem>>) attributes {dimension_semantics = [#tpu.dimension_semantics<parallel>, #tpu.dimension_semantics<parallel>], iteration_bounds = array<i64: 2, 1>, scalar_prefetch = 0 : i64, scratch_operands = 0 : i64, tpu.core_type = #tpu.core_type<tc>, window_params = [{transform_indices = @transform_0, window_bounds = array<i64: 1, 4, 2, 128>}, {transform_indices = @transform_1, window_bounds = array<i64: 1, 1, 2, 128>}, {transform_indices = @transform_2, window_bounds = array<i64: 1, 1, 2, 128>}]} {
    %c0 = arith.constant 0 : index
    %c0_0 = arith.constant 0 : index
    %c0_1 = arith.constant 0 : index
    %c0_2 = arith.constant 0 : index
    %0 = vector.load %arg2[%c0, %c0_0, %c0_1, %c0_2] : memref<1x4x2x128xf32, #tpu.memory_space<vmem>>, vector<1x4x2x128xf32>
    %1 = vector.shape_cast %0 : vector<1x4x2x128xf32> to vector<4x2x128xf32>
    %c0_3 = arith.constant 0 : index
    %c0_4 = arith.constant 0 : index
    %c0_5 = arith.constant 0 : index
    %c0_6 = arith.constant 0 : index
    %2 = vector.load %arg3[%c0_3, %c0_4, %c0_5, %c0_6] : memref<1x1x2x128xi32, #tpu.memory_space<vmem>>, vector<1x1x2x128xi32>
    %3 = vector.shape_cast %2 : vector<1x1x2x128xi32> to vector<2x128xi32>
    %4 = tpu.iota {dimensions = array<i32: 0>} : vector<2x128xi32>
    %5 = tpu.iota {dimensions = array<i32: 1>} : vector<2x128xi32>
    %c256_i32 = arith.constant 256 : i32
    %6 = arith.muli %arg1, %c256_i32 : i32
    %c128_i32 = arith.constant 128 : i32
    %7 = vector.broadcast %c128_i32 : i32 to vector<2x128xi32>
    %8 = arith.muli %4, %7 : vector<2x128xi32>
    %9 = vector.broadcast %6 : i32 to vector<2x128xi32>
    %10 = arith.addi %9, %8 : vector<2x128xi32>
    %11 = arith.addi %10, %5 : vector<2x128xi32>
    %c256_i32_7 = arith.constant 256 : i32
    %12 = vector.broadcast %c256_i32_7 : i32 to vector<2x128xi32>
    %13 = arith.cmpi slt, %11, %12 : vector<2x128xi32>
    %cst = arith.constant dense<0xFF800000> : vector<2x128xf32>
    %14 = vector.multi_reduction <maximumf>, %1, %cst [0] : vector<4x2x128xf32> to vector<2x128xf32>
    %15 = vector.shape_cast %14 : vector<2x128xf32> to vector<1x2x128xf32>
    %16 = vector.broadcast %15 : vector<1x2x128xf32> to vector<4x2x128xf32>
    %17 = arith.subf %1, %16 : vector<4x2x128xf32>
    %18 = math.exp %17 : vector<4x2x128xf32>
    %cst_8 = arith.constant dense<0.000000e+00> : vector<2x128xf32>
    %19 = vector.multi_reduction <add>, %18, %cst_8 [0] : vector<4x2x128xf32> to vector<2x128xf32>
    %20 = math.log %19 : vector<2x128xf32>
    %21 = arith.addf %14, %20 : vector<2x128xf32>
    %22 = tpu.iota {dimensions = array<i32: 0>} : vector<4x2x128xi32>
    %23 = vector.shape_cast %3 : vector<2x128xi32> to vector<1x2x128xi32>
    %24 = vector.broadcast %23 : vector<1x2x128xi32> to vector<4x2x128xi32>
    %25 = arith.cmpi eq, %22, %24 : vector<4x2x128xi32>
    %cst_9 = arith.constant 0.000000e+00 : f32
    %26 = vector.broadcast %cst_9 : f32 to vector<4x2x128xf32>
    %27 = arith.select %25, %1, %26 : vector<4x2x128xi1>, vector<4x2x128xf32>
    %cst_10 = arith.constant dense<0.000000e+00> : vector<2x128xf32>
    %28 = vector.multi_reduction <add>, %27, %cst_10 [0] : vector<4x2x128xf32> to vector<2x128xf32>
    %c255_i32 = arith.constant 255 : i32
    %29 = vector.broadcast %c255_i32 : i32 to vector<2x128xi32>
    %30 = arith.cmpi ne, %3, %29 : vector<2x128xi32>
    %31 = arith.andi %13, %30 : vector<2x128xi1>
    %32 = arith.subf %21, %28 : vector<2x128xf32>
    %cst_11 = arith.constant 0.000000e+00 : f32
    %33 = vector.broadcast %cst_11 : f32 to vector<2x128xf32>
    %34 = arith.select %31, %32, %33 : vector<2x128xi1>, vector<2x128xf32>
    %35 = arith.extui %31 : vector<2x128xi1> to vector<2x128xi32>
    %36 = arith.sitofp %35 : vector<2x128xi32> to vector<2x128xf32>
    %cst_12 = arith.constant dense<0.000000e+00> : vector<128xf32>
    %37 = vector.multi_reduction <add>, %34, %cst_12 [0] : vector<2x128xf32> to vector<128xf32>
    %38 = vector.shape_cast %37 : vector<128xf32> to vector<1x128xf32>
    %cst_13 = arith.constant dense<0.000000e+00> : vector<128xf32>
    %39 = vector.multi_reduction <add>, %36, %cst_13 [0] : vector<2x128xf32> to vector<128xf32>
    %40 = vector.shape_cast %39 : vector<128xf32> to vector<1x128xf32>
    %41 = tpu.concatenate %38, %40 in 0 : vector<1x128xf32>, vector<1x128xf32> -> vector<2x128xf32>
    %42 = vector.shape_cast %41 : vector<2x128xf32> to vector<1x1x2x128xf32>
    %c0_14 = arith.constant 0 : index
    %c0_15 = arith.constant 0 : index
    %c0_16 = arith.constant 0 : index
    %c0_17 = arith.constant 0 : index
    %43 = vector.load %arg4[%c0_14, %c0_15, %c0_16, %c0_17] : memref<1x1x2x128xf32, #tpu.memory_space<vmem>>, vector<1x1x2x128xf32>
    tpu.vector_store %arg4[%c0_14, %c0_15, %c0_16, %c0_17], %42 {strides = array<i32>} : memref<1x1x2x128xf32, #tpu.memory_space<vmem>>, vector<1x1x2x128xf32>,
    return
  }
  func.func @transform_0(%arg0: i32, %arg1: i32) -> (i32, i32, i32, i32) {
    %c0_i32 = arith.constant 0 : i32
    %c0_i32_0 = arith.constant 0 : i32
    %c0_i32_1 = arith.constant 0 : i32
    return %arg0, %c0_i32, %arg1, %c0_i32_0 : i32, i32, i32, i32
  }
  func.func @transform_1(%arg0: i32, %arg1: i32) -> (i32, i32, i32, i32) {
    %c0_i32 = arith.constant 0 : i32
    %c0_i32_0 = arith.constant 0 : i32
    %c0_i32_1 = arith.constant 0 : i32
    return %arg0, %c0_i32, %arg1, %c0_i32_0 : i32, i32, i32, i32
  }
  func.func @transform_2(%arg0: i32, %arg1: i32) -> (i32, i32, i32, i32) {
    %c0_i32 = arith.constant 0 : i32
    %c0_i32_0 = arith.constant 0 : i32
    %c0_i32_1 = arith.constant 0 : i32
    return %arg0, %arg1, %c0_i32, %c0_i32_0 : i32, i32, i32, i32
  }
}

</mosaic_0001>

<bundles_post_ra>
// kernel: tpu_custom_call.1
= control target key start
LH: loop header
LB: loop body
LE: loop exit
PB: predicated region body
PF: predicated region fallthrough
CT: control target
= control target key end

     0   :  { %7 = vsyncpa [#allocation3], 0  ;;  %s857_s0 = inlined_call_operand.hbm [shape: f32[2,4,2,128], index: 0, kind: input, shape index: {}]   ;;  %s858_s1 = inlined_call_operand.hbm [shape: s32[2,1,2,128], index: 1, kind: input, shape index: {}]   ;;  %s859_s2 = inlined_call_operand.hbm [shape: f32[2,1,2,128], index: 2, kind: output, shape index: {}]  }
   0x1   :  { %9 = vsyncpa [#allocation3 + $0x1], 0 }
   0x2   :  { %10 = vsyncpa [#allocation6], 0 }
   0x3   :  { %12 = vsyncpa [#allocation6 + $0x1], 0 }
   0x4   :  { %13 = vsyncpa [#allocation4], 0 }
   0x5   :  { %15 = vsyncpa [#allocation4 + $0x1], 0  ;;  %s693_s9 = smov 0   ;;  %s695_s10 = smov 0  }
   0x6   :  { %s697_s11 = smov 0   ;;  %s699_s12 = smov 0  }
   0x7   :  { %s701_s13 = smov 0   ;;  %s703_s14 = smov 0  }
   0x8 LB: > { %s428_s15 = sadd.s32 4294967295, %s673_s14   ;;  %s429_s16 = sadd.s32 4294967294, %s673_s14   ;;  %s673_s14 = sphi %s703_s14, %s21_s14   ;;  %s669_s13 = sphi %s701_s13, %s871_s13   ;;  %s665_s12 = sphi %s699_s12, %s870_s12   ;;  %s661_s11 = sphi %s697_s11, %s869_s11   ;;  %s657_s10 = sphi %s695_s10, %s868_s10   ;;  %s653_s9 = sphi %s693_s9, %s867_s9  }
   0x9   : > { %s33_s17 = sadd.s32 1, %s669_s13  ;;  %s42_s18 = sadd.s32 1, %s661_s11 }
   0xa   : > { %p35_p0 = scmp.ge.s32.totalorder %s33_s17, 2  ;;  %p49_p1 = scmp.ne.s32.totalorder %s661_s11, %s657_s10 }
   0xb   : > { %p50_p2 = scmp.eq.s32.totalorder %s673_s14, 0  ;;  %p55_p3 = scmp.ne.s32.totalorder %s657_s10, %s653_s9 }
   0xc   : > { %s873_s17 = smov (%p35_p0, %s33_s17), 0  ;;  %p56_p5 = scmp.eq.s32.totalorder %s428_s15, 0 }
   0xd   : > { %p734_p4 = por %p50_p2, %p49_p1  ;;  %s37_s20 = ssub.s32 %s669_s13, %s873_s17 }
   0xe   : > { %p109_p6 = scmp.eq.s32.totalorder %s428_s15, 1  ;;  %p40_p7 = scmp.eq.s32.totalorder %s37_s20, 0 }
   0xf   : > { %p740_p8 = por %p56_p5, %p55_p3  ;;  %p115_p10 = scmp.eq.s32.totalorder %s429_s16, 1 }
  0x10   : > { %p744_p9 = por %p109_p6, %p49_p1  ;;  %p431_p12 = scmp.ge.s32.totalorder %s673_s14, 2 }
  0x11   : > { %s749_s23 = scalar_select %p40_p7, %s661_s11, %s42_s18  }
  0x12   : > { %p751_p11 = por %p115_p10, %p55_p3  ;;  %p464_p13 = scmp.lt.s32.totalorder %s673_s14, 2 }
  0x13   : > { %s135_s25 = sand.u32 1, %s661_s11   ;;  %s446_s27 = sshll.u32 %s669_s13, 3 }
  0x14   : > { %s432_s26 = sshll.u32 %s135_s25, 3  ;;  %s145_s30 = scalar_lea.hbm %s857_s0, %s446_s27 }
  0x15   : > { %s139_s3 = scalar_lea.vmem [#allocation2], %s432_s26  ;;  %s146_s5 = sshll.u32 %s145_s30, 4  ;;  %s147_s5 = int_to_ptr.hbm [resolvable:$true] %s146_s5 }
  0x16   : > { %s148_s4 = sshll.u32 %s139_s3, 4  ;;  %p764_p0 = pnand %p464_p13, %p734_p4  ;;  %s149_s4 = int_to_ptr.vmem [resolvable:$true] %s148_s4 }
  0x17   : > { %p437_p1 = scmp.ge.s32.totalorder %s673_s14, 1  ;;  %s136_s7 = scalar_lea.sflag [#allocation3], %s135_s25 }
  0x18   : > { %s675_s8 = smov 32   ;;  %s676_s15 = smov 2  }
  0x19   : > { %456 = dma.hbm_to_vmem [thread:$0]  (!%p764_p0), %s147_s5, 128, %s149_s4, %s136_s7, %s675_s8, %s675_s8, %s676_s15  }
  0x1a   : > { %p176_p2 = scmp.lt.s32.totalorder %s673_s14, 3  ;;  %s435_s16 = sshll.u32 %s135_s25, 1 }
  0x1b   : > { %s436_s18 = sshll.u32 %s669_s13, 1  ;;  %s162_s27 = scalar_lea.vmem [#allocation5], %s435_s16 }
  0x1c   : > { %p177_p3 = pnand %p437_p1, %p176_p2  ;;  %s167_s19 = scalar_lea.hbm %s858_s1, %s436_s18 }
  0x1d   : > { %s171_s28 = sshll.u32 %s162_s27, 4  ;;  %s169_s29 = sshll.u32 %s167_s19, 4  ;;  %s172_s28 = int_to_ptr.vmem [resolvable:$true] %s171_s28  ;;  %s170_s29 = int_to_ptr.hbm [resolvable:$true] %s169_s29 }
  0x1e   : > { %s159_s30 = scalar_lea.sflag [#allocation6], %s135_s25  ;;  %180 = sbr.rel (%p177_p3) target bundleno = 96 (0x60), region = 28 }
  0x1f   : > { %459 = dma.hbm_to_vmem [thread:$0]  (!%p764_p0), %s170_s29, 32, %s172_s28, %s159_s30  }
  0x20   : > { %s779_s3 = sand.u32 (!%p177_p3), 1, %s657_s10  }
  0x21   : > { %s438_s4 = sshll.u32 (!%p177_p3), %s779_s3, 3  ;;  %s183_s5 = scalar_lea.sflag (!%p177_p3), [#allocation3], %s779_s3 }
  0x22   : > { %s186_s7 = scalar_lea.vmem (!%p177_p3), [#allocation2], %s438_s4 }
  0x23   : > { %640 = dma.done.wait (%p740_p8), %s183_s5, 128  }
  0x24   : > { %642 = vsyncadd (%p740_p8), %s183_s5, 4294967168  ;;  %s439_s25 = sshll.u32 %s779_s3, 1  ;;  %s193_s6 = scalar_lea.sflag [#allocation6], %s779_s3 }
  0x25   : > { %s196_s8 = scalar_lea.vmem [#allocation5], %s439_s25 }
  0x26   : > { %644 = dma.done.wait (%p740_p8), %s193_s6, 32  }
  0x27   : > { %646 = vsyncadd (%p740_p8), %s193_s6, 4294967264  ;;  %vm238_vm0 = vcmask 1041408   ;;  %v223_v0 = vld [vmem:[%s186_s7] sm:$0x3]  ;;  %v224_v1 = vld [vmem:[%s186_s7 + $0x2] sm:$0x3]  ;;  %v228_v3 = vlaneseq }
  0x28   : > { %v225_v2 = vld [vmem:[%s186_s7 + $0x4] sm:$0x3]  ;;  %v226_v4 = vld [vmem:[%s186_s7 + $0x6] sm:$0x3]  ;;  %v239_v5 = vsel %vm238_vm0, %v223_v0, -inf  ;;  %v240_v6 = vsel %vm238_vm0, %v224_v1, -inf }
  0x29   : > { %v241_v7 = vsel %vm238_vm0, %v225_v2, -inf  ;;  %v242_v8 = vsel %vm238_vm0, %v226_v4, -inf  ;;  %v243_v9 = vmax.f32 %v239_v5, %v240_v6  ;;  %v229_v11 = vshrl.u32 %v228_v3, 7  ;;  %v227_v23 = vld [vmem:[%s196_s8] sm:$0x3]  ;;  %s443_s21 = sshll.u32 %s665_s12, 1 }
  0x2a   : > { %v244_v10 = vmax.f32 %v241_v7, %v242_v8  ;;  %v231_v17 = vand.u32 127, %v228_v3  ;;  %vm268_vm1 = vcmp.eq.s32.totalorder %v227_v23, 0  ;;  %vm269_vm2 = vcmp.eq.s32.totalorder %v227_v23, 1  ;;  %s318_s18 = scalar_lea.hbm %s859_s2, %s443_s21  ;;  %s222_s20 = scalar_lea.vmem [#allocation7], %s439_s25 }
  0x2b   : > { %v233_v18 = vmul.u32 128, %v229_v11  ;;  %vm283_vm4 = vcmp.ne.s32.totalorder %v227_v23, 255  ;;  %v272_v30 = vsel %vm268_vm1, %v223_v0, 0.0  ;;  %v273_v31 = vsel %vm269_vm2, %v224_v1, 0.0  ;;  %s320_s26 = sshll.u32 %s222_s20, 4  ;;  %s322_s19 = sshll.u32 %s318_s18, 4  ;;  %s321_s26 = int_to_ptr.vmem [resolvable:$true] %s320_s26  ;;  %s323_s19 = int_to_ptr.hbm [resolvable:$true] %s322_s19 }
  0x2c   : > { %v245_v12 = vmax.f32 %v243_v9, %v244_v10  ;;  %vm270_vm5 = vcmp.eq.s32.totalorder %v227_v23, 2  ;;  %v276_v38 = vsel %vm238_vm0, %v272_v30, 0.0  ;;  %v277_v39 = vsel %vm238_vm0, %v273_v31, 0.0  ;;  %s307_s12 = scalar_lea.sflag [#allocation4], %s779_s3  ;;  %s601_s27 = sshra.s32 %s323_s19, 4  ;;  %s602_s27 = int_to_ptr.hbm [resolvable:$true] %s601_s27 }
  0x2d   : > { %v236_v24 = vadd.s32 %v233_v18, %v231_v17  ;;  %v274_v40 = vsel %vm270_vm5, %v225_v2, 0.0  ;;  %v677_v41 = vmov 0.0   ;;  %vm271_vm7 = vcmp.eq.s32.totalorder %v227_v23, 3  ;;  %s603_s28 = scalar_lea.hbm %s602_s27, 2  ;;  %s607_s4 = scalar_lea.hbm %s859_s2, 4 }
  0x2e   : > { %v246_v13 = vsub.f32 %v223_v0, %v245_v12  ;;  %v247_v14 = vsub.f32 %v224_v1, %v245_v12  ;;  %v248_v15 = vsub.f32 %v225_v2, %v245_v12  ;;  %v249_v16 = vsub.f32 %v226_v4, %v245_v12  ;;  %p604_p4 = scmp.ne.s32.totalorder %s602_s27, %s603_s28  ;;  %p608_p7 = scmp.lt.s32.totalorder %s602_s27, %s859_s2 }
  0x2f   : > { %vm237_vm3 = vcmp.lt.s32.totalorder %v236_v24, 256  ;;  %v278_v44 = vadd.f32 %v277_v39, %v276_v38  ;;  %v279_v45 = vsel %vm238_vm0, %v274_v40, 0.0  ;;  %v275_v47 = vsel %vm271_vm7, %v226_v4, 0.0  ;;  %p609_p8 = scmp.lt.s32.totalorder %s607_s4, %s603_s28 }
  0x30   : > { %v250_v19 = vmul.f32 1.442695, %v246_v13  ;;  %v252_v20 = vmul.f32 1.442695, %v247_v14  ;;  %v254_v21 = vmul.f32 1.442695, %v248_v15  ;;  %vm802_vm6 = vmand %vm237_vm3, %vm283_vm4  ;;  %p605_p5 = pnand %p604_p4, %p744_p9 }
  0x31   : > { %v256_v22 = vmul.f32 1.442695, %v249_v16  ;;  %v441_v42 = vsel %vm802_vm6, 1.0, %v677_v41  ;;  %v280_v48 = vadd.f32 %v279_v45, %v278_v44  ;;  %v281_v50 = vsel %vm238_vm0, %v275_v47, 0.0  ;;  %p610_p10 = por %p609_p8, %p608_p7 }
  0x32   : > { %517 = vpow2.f32 %v250_v19  ;;  %v296_v46 = vsel %vm238_vm0, %v441_v42, 0.0  ;;  %vm303_vm8 = vcmask 1040384   ;;  %p606_p6 = pneg %p605_p5 }
  0x33   : > { %519 = vpow2.f32 %v252_v20  ;;  %v297_v49 = vrot.slane %v296_v46, 4  ;;  %v282_v53 = vadd.f32 %v281_v50, %v280_v48 }
  0x34   : > { %521 = vpow2.f32 %v254_v21  ;;  %p611_p13 = pnand %p610_p10, %p606_p6 }
  0x35   : > { %523 = vpow2.f32 %v256_v22  ;;  %v298_v54 = vadd.f32 %v297_v49, %v296_v46 }
  0x37   : > { %v299_v57 = vrot.slane %v298_v54, 2 }
  0x38   : > { %v518_v25 = vpop.eup %517 }
  0x39   : > { %v520_v26 = vpop.eup %519  ;;  %v258_v27 = vsel %vm238_vm0, %v518_v25, 0.0  ;;  %v300_v61 = vadd.f32 %v299_v57, %v298_v54 }
  0x3a   : > { %v522_v28 = vpop.eup %521  ;;  %v259_v29 = vsel %vm238_vm0, %v520_v26, 0.0 }
  0x3b   : > { %v524_v32 = vpop.eup %523  ;;  %v260_v33 = vadd.f32 %v259_v29, %v258_v27  ;;  %v261_v34 = vsel %vm238_vm0, %v522_v28, 0.0  ;;  %v301_v0 = vrot.slane %v300_v61, 1 }
  0x3c   : > { %v263_v36 = vsel %vm238_vm0, %v524_v32, 0.0 }
  0x3d   : > { %v262_v37 = vadd.f32 %v261_v34, %v260_v33  ;;  %v302_v3 = vadd.f32 %v301_v0, %v300_v61 }
  0x3f   : > { %v264_v43 = vadd.f32 %v263_v36, %v262_v37 }
  0x41   : > { %525 = vlog2.f32 %v264_v43 }
  0x47   : > { %v526_v51 = vpop.eup %525 }
  0x48   : > { %v266_v52 = vmul.f32 0.6931472, %v526_v51 }
  0x4a   : > { %v267_v55 = vadd.f32 %v266_v52, %v245_v12 }
  0x4c   : > { %v285_v56 = vsub.f32 %v267_v55, %v282_v53 }
  0x4e   : > { %v286_v58 = vsel %vm802_vm6, %v285_v56, 0.0 }
  0x4f   : > { %v289_v59 = vsel %vm238_vm0, %v286_v58, 0.0 }
  0x50   : > { %v290_v60 = vrot.slane %v289_v59, 4 }
  0x52   : > { %v291_v62 = vadd.f32 %v290_v60, %v289_v59 }
  0x54   : > { %v292_v63 = vrot.slane %v291_v62, 2 }
  0x56   : > { %v293_v1 = vadd.f32 %v292_v63, %v291_v62 }
  0x58   : > { %v294_v2 = vrot.slane %v293_v1, 1 }
  0x5a   : > { %v295_v4 = vadd.f32 %v294_v2, %v293_v1 }
  0x5c   : > { %v304_v5 = vsel %vm303_vm8, %v295_v4, %v302_v3 }
  0x5d   : > { %305 = vst [vmem:[%s222_s20] sm:$0x3] %v304_v5 }
  0x5e   : > { %614 = shalt.err (!%p611_p13)
}
  0x5f   : > { %451 = dma.vmem_to_hbm [thread:$0]  (%p744_p9), %s321_s26, 32, %s323_s19, %s307_s12  }
  0x60 PF: > { %s334_s3 = sand.u32 1, %s653_s9   ;;  %p461_p0 = pnand %p431_p12, %p751_p11 }
  0x61   : > { %s335_s25 = scalar_lea.sflag [#allocation4], %s334_s3 }
  0x62   : > { %p462_p1 = pneg %p461_p0 }
  0x64   : > { %648 = dma.done.wait (%p462_p1), %s335_s25, 32  }
  0x65   : > { %650 = vsyncadd (%p462_p1), %s335_s25, 4294967264  ;;  %s21_s14 = sadd.s32 1, %s673_s14   ;;  %s867_s9 = smov %s657_s10 }
  0x66   : > { %p18_p2 = scmp.ge.s32.totalorder %s21_s14, 4   ;;  %s868_s10 = smov %s661_s11 }
  0x67   : > { %s869_s11 = smov %s749_s23  ;;  %s870_s12 = smov %s669_s13 }
  0x68   : > { %s871_s13 = smov %s873_s17  ;;  %20 = sbr.rel (!%p18_p2) target bundleno = 8 (0x8), region = 86 }
  0x6d   :  { %341 = vsyncpa [#allocation3], 1 }
  0x6e   :  { %343 = vsyncpa [#allocation3 + $0x1], 1 }
  0x6f   :  { %344 = vsyncpa [#allocation6], 1 }
  0x70   :  { %346 = vsyncpa [#allocation6 + $0x1], 1 }
  0x71   :  { %347 = vsyncpa [#allocation4], 1 }
  0x72   :  { %349 = vsyncpa [#allocation4 + $0x1], 1 }

</bundles_post_ra>
